<compile_context>
chip_gen: v7x
topology: tpu7x:2x2x1
jax: 0.10.0
libtpu: 0.0.40
codegen_flags: <defaults>
</compile_context>

<pallas_src>
import numpy as np
import jax
import jax.numpy as jnp
from jax.experimental import pallas as pl
from jax.experimental.pallas import tpu as pltpu

# ---------------- static FSQ configuration ----------------
LEVELS = [8, 5, 5, 5]          # codebook levels
NUM_CODEBOOKS = 1              # keep_num_codebooks_dim=False
CODEBOOK_DIM = len(LEVELS)
EFF_CB_DIM = CODEBOOK_DIM * NUM_CODEBOOKS
DIM = 32                       # model feature dim != EFF -> has_projections=True
EPS = 1e-3

# per-level constants (f32, matching the reference math)
_LEVELS_F = np.array(LEVELS, dtype=np.float32)
_HALF_L = ((_LEVELS_F - 1.0) * np.float32(1.0 + EPS) / np.float32(2.0)).astype(np.float32)
_OFFSET = np.where(np.array(LEVELS) % 2 == 0, 0.5, 0.0).astype(np.float32)
_SHIFT = np.arctanh(_OFFSET / _HALF_L).astype(np.float32)
_HALF_W = (np.array(LEVELS, dtype=np.int64) // 2).astype(np.float32)

_HALF_L_EFF = np.tile(_HALF_L, NUM_CODEBOOKS)
_OFFSET_EFF = np.tile(_OFFSET, NUM_CODEBOOKS)
_SHIFT_EFF = np.tile(_SHIFT, NUM_CODEBOOKS)
_INV_HALF_W_EFF = np.tile((1.0 / _HALF_W).astype(np.float32), NUM_CODEBOOKS)


def _fsq_kernel(x_ref, w_in_ref, shift_b_ref, half_l_ref, offset_ref,
                w_out_ref, b_out_ref, out_ref):
    # x block: (bb, DIM, TN); tokens live on the 128-lane axis.
    w_in = w_in_ref[...]          # (EFF, DIM)
    shift_b = shift_b_ref[...]    # (EFF, 1) = b_in + atanh(offset/half_l)
    half_l = half_l_ref[...]      # (EFF, 1)
    offset = offset_ref[...]      # (EFF, 1)
    w_out = w_out_ref[...]        # (DIM, EFF) with 1/half_width folded in (exact)
    b_out = b_out_ref[...]        # (DIM, 1)

    bb = x_ref.shape[0]
    for i in range(bb):           # small static unroll (bb <= 8)
        x = x_ref[i].astype(jnp.float32)                                  # (DIM, TN)
        # project_in, channel-first: (EFF, DIM) @ (DIM, TN); bias folded in shift.
        z = jnp.dot(w_in, x, preferred_element_type=jnp.float32) + shift_b
        # bound() + round_ste forward value (force_quantization_f32 path).
        q = jnp.round(jnp.tanh(z) * half_l - offset)
        # project_out, channel-first; 1/half_width already folded into w_out.
        out = jnp.dot(w_out, q, preferred_element_type=jnp.float32) + b_out
        out_ref[i] = out.astype(out_ref.dtype)


def _device_kind():
    try:
        return jax.devices()[0].device_kind.lower()
    except Exception:
        return ""


def _largest_divisor_leq(n, cap):
    cap = max(1, min(n, cap))
    for d in range(cap, 0, -1):
        if n % d == 0:
            return d
    return 1


def _pick_tiles(B, N, itemsize):
    """Pick (bb, tn, per-buffer bytes) from the HBM roofline per generation."""
    kind = _device_kind()
    if "v7" in kind:
        target_buf = 4 << 20      # ~3.2 TB/s HBM -> need big steps; 16 MiB total stream
    else:
        target_buf = 2 << 20      # v5e/v6e: ~8 MiB total stream, fits 16 MiB default

    # Token tile (lane axis): multiple of 128 when possible, else the full axis.
    if N >= 128:
        tn_want = max(128, 128 * ((target_buf // (DIM * itemsize)) // 128))
        tn = min(tn_want, 128 * (N // 128))
    else:
        tn = N

    # Batch block: restore large DMA payloads when N is small. Divisor of B so
    # no partial batch blocks; capped at 8 (static unroll in the kernel).
    buf_bytes = DIM * tn * itemsize
    bb_want = max(1, min(B, 8, -(-target_buf // buf_bytes)))
    bb = _largest_divisor_leq(B, bb_want)

    # Megacore balance (v7x has 2 TCs; both grid axes are "parallel"): make
    # sure there are at least ~4 grid steps, shrinking tn (then bb) if needed.
    if "v7" in kind:
        while (-(-B // bb)) * (-(-N // tn)) < 4:
            if tn >= 256:
                tn = max(128, 128 * ((tn // 2) // 128))
            elif bb > 1:
                bb = _largest_divisor_leq(B, bb - 1)
            else:
                break

    return bb, tn, bb * DIM * tn * itemsize


def fsq_forward(x, w_in, b_in, w_out, b_out):
    """FSQ.forward. x: [B, DIM, N] channel-first (as the PyTorch module gets it).

    w_in : (DIM, EFF)  pre-transposed project_in weight  (y = x @ w_in + b_in)
    w_out: (EFF, DIM)  pre-transposed project_out weight
    Returns (out [B, DIM, N], zeros([1]), None) — same as the PyTorch forward.
    """
    B, D, N = x.shape
    assert D == DIM

    f32 = jnp.float32
    w_in_cf = jnp.asarray(w_in, f32).T                                      # (EFF, DIM)
    shift_b = (jnp.asarray(b_in, f32) + jnp.asarray(_SHIFT_EFF))[:, None]   # (EFF, 1)
    half_l = jnp.asarray(_HALF_L_EFF)[:, None]                              # (EFF, 1)
    offset = jnp.asarray(_OFFSET_EFF)[:, None]                              # (EFF, 1)
    w_out_cf = (jnp.asarray(w_out, f32) * _INV_HALF_W_EFF[:, None]).T       # (DIM, EFF)
    b_out_cf = jnp.asarray(b_out, f32)[:, None]                             # (DIM, 1)

    itemsize = int(jnp.dtype(x.dtype).itemsize)
    bb, tn, buf_bytes = _pick_tiles(B, N, itemsize)
    grid = (pl.cdiv(B, bb), pl.cdiv(N, tn))

    park = lambda b, n: (0, 0)   # small resident params (constant block index)

    # Streaming VMEM need: x + out, each double-buffered.
    stream_bytes = 4 * buf_bytes
    cp_kwargs = dict(dimension_semantics=("parallel", "parallel"))
    if stream_bytes > (12 << 20):   # only exceed smallest (v5e) scoped default if needed
        cp_kwargs["vmem_limit_bytes"] = int(stream_bytes + (4 << 20))

    out = pl.pallas_call(
        _fsq_kernel,
        out_shape=jax.ShapeDtypeStruct((B, DIM, N), x.dtype),
        grid_spec=pl.GridSpec(
            grid=grid,
            in_specs=[
                pl.BlockSpec((bb, DIM, tn), lambda b, n: (b, 0, n)),   # x stream
                pl.BlockSpec((EFF_CB_DIM, DIM), park),                 # W_in^T
                pl.BlockSpec((EFF_CB_DIM, 1), park),                   # b_in + shift
                pl.BlockSpec((EFF_CB_DIM, 1), park),                   # half_l
                pl.BlockSpec((EFF_CB_DIM, 1), park),                   # offset
                pl.BlockSpec((DIM, EFF_CB_DIM), park),                 # (W_out/half_w)^T
                pl.BlockSpec((DIM, 1), park),                          # b_out
            ],
            out_specs=pl.BlockSpec((bb, DIM, tn), lambda b, n: (b, 0, n)),
        ),
        compiler_params=pltpu.CompilerParams(**cp_kwargs),
    )(x, w_in_cf, shift_b, half_l, offset, w_out_cf, b_out_cf)

    # indices are never returned by FSQ.forward (keep_num_codebooks_dim=False),
    # so the codes_to_indices path is intentionally not computed here.
    return out, jnp.zeros([1], dtype=jnp.float32), None


def fsq_forward_ref(x, w_in, b_in, w_out, b_out):
    """Pure-JAX reference mirroring the PyTorch forward (token-major math)."""
    z = jnp.transpose(x, (0, 2, 1)).astype(jnp.float32) @ w_in + b_in
    levels = jnp.array(LEVELS, dtype=jnp.float32)
    half_l = (levels - 1.0) * (1.0 + EPS) / 2.0
    offset = jnp.where(jnp.array(LEVELS) % 2 == 0, 0.5, 0.0)
    shift = jnp.arctanh(offset / half_l)
    half_w = jnp.array([l // 2 for l in LEVELS], dtype=jnp.float32)
    bounded = jnp.tanh(z + shift) * half_l - offset
    codes = jnp.round(bounded) / half_w
    out = codes @ w_out + b_out
    return jnp.transpose(out, (0, 2, 1)).astype(x.dtype)


if __name__ == "__main__":
    key = jax.random.PRNGKey(0)
    k_x, k_wi, k_bi, k_wo, k_bo, k_x2 = jax.random.split(key, 6)

    # Deterministic Linear params (stored pre-transposed: y = x @ W + b)
    w_in = jax.random.uniform(k_wi, (DIM, EFF_CB_DIM), dtype=jnp.float32,
                              minval=-1.0, maxval=1.0) / np.sqrt(DIM)
    b_in = jax.random.uniform(k_bi, (EFF_CB_DIM,), dtype=jnp.float32,
                              minval=-1.0, maxval=1.0) / np.sqrt(DIM)
    w_out = jax.random.uniform(k_wo, (EFF_CB_DIM, DIM), dtype=jnp.float32,
                               minval=-1.0, maxval=1.0) / np.sqrt(EFF_CB_DIM)
    b_out = jax.random.uniform(k_bo, (DIM,), dtype=jnp.float32,
                               minval=-1.0, maxval=1.0) / np.sqrt(EFF_CB_DIM)

    # Small demo shape (exercises the small-N / batch-blocking path).
    B, N = 2, 16
    x = jax.random.normal(k_x, (B, DIM, N), dtype=jnp.float32)
    out, aux_loss, _ = fsq_forward(x, w_in, b_in, w_out, b_out)
    jax.block_until_ready(out)
    ref = fsq_forward_ref(x, w_in, b_in, w_out, b_out)
    np.testing.assert_allclose(np.asarray(out), np.asarray(ref),
                               rtol=1e-5, atol=1e-5)
    assert out.shape == (B, DIM, N) and aux_loss.shape == (1,)

    # A second, slightly larger check exercising multi-tile tokens + a partial
    # last token tile (N not a multiple of 128).
    B2, N2 = 2, 1000
    x2 = jax.random.normal(k_x2, (B2, DIM, N2), dtype=jnp.float32)
    out2, _, _ = fsq_forward(x2, w_in, b_in, w_out, b_out)
    jax.block_until_ready(out2)
    ref2 = fsq_forward_ref(x2, w_in, b_in, w_out, b_out)
    np.testing.assert_allclose(np.asarray(out2), np.asarray(ref2),
                               rtol=1e-5, atol=1e-5)

    print("KERNEL_OK")
</pallas_src>

<mosaic_0001>
module attributes {stable_mosaic.version = 11 : i64} {
  func.func @_fsq_kernel(%arg0: i32, %arg1: i32, %arg2: memref<2x32x16xf32, #tpu.memory_space<vmem>>, %arg3: memref<4x32xf32, #tpu.memory_space<vmem>>, %arg4: memref<4x1xf32, #tpu.memory_space<vmem>>, %arg5: memref<4x1xf32, #tpu.memory_space<vmem>>, %arg6: memref<4x1xf32, #tpu.memory_space<vmem>>, %arg7: memref<32x4xf32, #tpu.memory_space<vmem>>, %arg8: memref<32x1xf32, #tpu.memory_space<vmem>>, %arg9: memref<2x32x16xf32, #tpu.memory_space<vmem>>) attributes {dimension_semantics = [#tpu.dimension_semantics<parallel>, #tpu.dimension_semantics<parallel>], iteration_bounds = array<i64: 1, 1>, scalar_prefetch = 0 : i64, scratch_operands = 0 : i64, tpu.core_type = #tpu.core_type<tc>, window_params = [{transform_indices = @transform_0, window_bounds = array<i64: 2, 32, 16>}, {pipeline_mode = #tpu.pipeline_mode<synchronous>, transform_indices = @transform_1, window_bounds = array<i64: 4, 32>}, {pipeline_mode = #tpu.pipeline_mode<synchronous>, transform_indices = @transform_2, window_bounds = array<i64: 4, 1>}, {pipeline_mode = #tpu.pipeline_mode<synchronous>, transform_indices = @transform_3, window_bounds = array<i64: 4, 1>}, {pipeline_mode = #tpu.pipeline_mode<synchronous>, transform_indices = @transform_4, window_bounds = array<i64: 4, 1>}, {pipeline_mode = #tpu.pipeline_mode<synchronous>, transform_indices = @transform_5, window_bounds = array<i64: 32, 4>}, {pipeline_mode = #tpu.pipeline_mode<synchronous>, transform_indices = @transform_6, window_bounds = array<i64: 32, 1>}, {transform_indices = @transform_7, window_bounds = array<i64: 2, 32, 16>}]} {
    %c0 = arith.constant 0 : index
    %c0_0 = arith.constant 0 : index
    %0 = vector.load %arg3[%c0, %c0_0] : memref<4x32xf32, #tpu.memory_space<vmem>>, vector<4x32xf32>
    %c0_1 = arith.constant 0 : index
    %c0_2 = arith.constant 0 : index
    %1 = vector.load %arg4[%c0_1, %c0_2] : memref<4x1xf32, #tpu.memory_space<vmem>>, vector<4x1xf32>
    %c0_3 = arith.constant 0 : index
    %c0_4 = arith.constant 0 : index
    %2 = vector.load %arg5[%c0_3, %c0_4] : memref<4x1xf32, #tpu.memory_space<vmem>>, vector<4x1xf32>
    %c0_5 = arith.constant 0 : index
    %c0_6 = arith.constant 0 : index
    %3 = vector.load %arg6[%c0_5, %c0_6] : memref<4x1xf32, #tpu.memory_space<vmem>>, vector<4x1xf32>
    %c0_7 = arith.constant 0 : index
    %c0_8 = arith.constant 0 : index
    %4 = vector.load %arg7[%c0_7, %c0_8] : memref<32x4xf32, #tpu.memory_space<vmem>>, vector<32x4xf32>
    %c0_9 = arith.constant 0 : index
    %c0_10 = arith.constant 0 : index
    %5 = vector.load %arg8[%c0_9, %c0_10] : memref<32x1xf32, #tpu.memory_space<vmem>>, vector<32x1xf32>
    %c0_11 = arith.constant 0 : index
    %c0_12 = arith.constant 0 : index
    %c0_13 = arith.constant 0 : index
    %6 = vector.load %arg2[%c0_11, %c0_12, %c0_13] : memref<2x32x16xf32, #tpu.memory_space<vmem>>, vector<1x32x16xf32>
    %7 = vector.shape_cast %6 : vector<1x32x16xf32> to vector<32x16xf32>
    %cst = arith.constant dense<0.000000e+00> : vector<4x16xf32>
    %8 = tpu.matmul %0, %7, %cst {dimension_numbers = #tpu.dot_dimension_numbers<[1], [0], [0], [1], [0, 0, 1, 1], [], []>} : vector<4x32xf32>, vector<32x16xf32>, vector<4x16xf32> -> vector<4x16xf32>
    %9 = vector.broadcast %1 : vector<4x1xf32> to vector<4x16xf32>
    %10 = arith.addf %8, %9 : vector<4x16xf32>
    %11 = math.tanh %10 : vector<4x16xf32>
    %12 = vector.broadcast %2 : vector<4x1xf32> to vector<4x16xf32>
    %13 = arith.mulf %11, %12 : vector<4x16xf32>
    %14 = vector.broadcast %3 : vector<4x1xf32> to vector<4x16xf32>
    %15 = arith.subf %13, %14 : vector<4x16xf32>
    %16 = math.roundeven %15 : vector<4x16xf32>
    %cst_14 = arith.constant dense<0.000000e+00> : vector<32x16xf32>
    %17 = tpu.matmul %4, %16, %cst_14 {dimension_numbers = #tpu.dot_dimension_numbers<[1], [0], [0], [1], [0, 0, 1, 1], [], []>} : vector<32x4xf32>, vector<4x16xf32>, vector<32x16xf32> -> vector<32x16xf32>
    %18 = vector.broadcast %5 : vector<32x1xf32> to vector<32x16xf32>
    %19 = arith.addf %17, %18 : vector<32x16xf32>
    %c0_15 = arith.constant 0 : index
    %c0_16 = arith.constant 0 : index
    %c0_17 = arith.constant 0 : index
    %20 = vector.load %arg9[%c0_15, %c0_16, %c0_17] : memref<2x32x16xf32, #tpu.memory_space<vmem>>, vector<1x32x16xf32>
    %21 = vector.shape_cast %20 : vector<1x32x16xf32> to vector<32x16xf32>
    %22 = vector.shape_cast %19 : vector<32x16xf32> to vector<1x32x16xf32>
    tpu.vector_store %arg9[%c0_15, %c0_16, %c0_17], %22 {strides = array<i32>} : memref<2x32x16xf32, #tpu.memory_space<vmem>>, vector<1x32x16xf32>,
    %c1 = arith.constant 1 : index
    %c0_18 = arith.constant 0 : index
    %c0_19 = arith.constant 0 : index
    %23 = vector.load %arg2[%c1, %c0_18, %c0_19] : memref<2x32x16xf32, #tpu.memory_space<vmem>>, vector<1x32x16xf32>
    %24 = vector.shape_cast %23 : vector<1x32x16xf32> to vector<32x16xf32>
    %cst_20 = arith.constant dense<0.000000e+00> : vector<4x16xf32>
    %25 = tpu.matmul %0, %24, %cst_20 {dimension_numbers = #tpu.dot_dimension_numbers<[1], [0], [0], [1], [0, 0, 1, 1], [], []>} : vector<4x32xf32>, vector<32x16xf32>, vector<4x16xf32> -> vector<4x16xf32>
    %26 = vector.broadcast %1 : vector<4x1xf32> to vector<4x16xf32>
    %27 = arith.addf %25, %26 : vector<4x16xf32>
    %28 = math.tanh %27 : vector<4x16xf32>
    %29 = vector.broadcast %2 : vector<4x1xf32> to vector<4x16xf32>
    %30 = arith.mulf %28, %29 : vector<4x16xf32>
    %31 = vector.broadcast %3 : vector<4x1xf32> to vector<4x16xf32>
    %32 = arith.subf %30, %31 : vector<4x16xf32>
    %33 = math.roundeven %32 : vector<4x16xf32>
    %cst_21 = arith.constant dense<0.000000e+00> : vector<32x16xf32>
    %34 = tpu.matmul %4, %33, %cst_21 {dimension_numbers = #tpu.dot_dimension_numbers<[1], [0], [0], [1], [0, 0, 1, 1], [], []>} : vector<32x4xf32>, vector<4x16xf32>, vector<32x16xf32> -> vector<32x16xf32>
    %35 = vector.broadcast %5 : vector<32x1xf32> to vector<32x16xf32>
    %36 = arith.addf %34, %35 : vector<32x16xf32>
    %c1_22 = arith.constant 1 : index
    %c0_23 = arith.constant 0 : index
    %c0_24 = arith.constant 0 : index
    %37 = vector.load %arg9[%c1_22, %c0_23, %c0_24] : memref<2x32x16xf32, #tpu.memory_space<vmem>>, vector<1x32x16xf32>
    %38 = vector.shape_cast %37 : vector<1x32x16xf32> to vector<32x16xf32>
    %39 = vector.shape_cast %36 : vector<32x16xf32> to vector<1x32x16xf32>
    tpu.vector_store %arg9[%c1_22, %c0_23, %c0_24], %39 {strides = array<i32>} : memref<2x32x16xf32, #tpu.memory_space<vmem>>, vector<1x32x16xf32>,
    return
  }
  func.func @transform_0(%arg0: i32, %arg1: i32) -> (i32, i32, i32) {
    %c0_i32 = arith.constant 0 : i32
    %c0_i32_0 = arith.constant 0 : i32
    return %arg0, %c0_i32, %arg1 : i32, i32, i32
  }
  func.func @transform_1(%arg0: i32, %arg1: i32) -> (i32, i32) {
    %c0_i32 = arith.constant 0 : i32
    %c0_i32_0 = arith.constant 0 : i32
    %c0_i32_1 = arith.constant 0 : i32
    return %c0_i32, %c0_i32_0 : i32, i32
  }
  func.func @transform_2(%arg0: i32, %arg1: i32) -> (i32, i32) {
    %c0_i32 = arith.constant 0 : i32
    %c0_i32_0 = arith.constant 0 : i32
    %c0_i32_1 = arith.constant 0 : i32
    return %c0_i32, %c0_i32_0 : i32, i32
  }
  func.func @transform_3(%arg0: i32, %arg1: i32) -> (i32, i32) {
    %c0_i32 = arith.constant 0 : i32
    %c0_i32_0 = arith.constant 0 : i32
    %c0_i32_1 = arith.constant 0 : i32
    return %c0_i32, %c0_i32_0 : i32, i32
  }
  func.func @transform_4(%arg0: i32, %arg1: i32) -> (i32, i32) {
    %c0_i32 = arith.constant 0 : i32
    %c0_i32_0 = arith.constant 0 : i32
    %c0_i32_1 = arith.constant 0 : i32
    return %c0_i32, %c0_i32_0 : i32, i32
  }
  func.func @transform_5(%arg0: i32, %arg1: i32) -> (i32, i32) {
    %c0_i32 = arith.constant 0 : i32
    %c0_i32_0 = arith.constant 0 : i32
    %c0_i32_1 = arith.constant 0 : i32
    return %c0_i32, %c0_i32_0 : i32, i32
  }
  func.func @transform_6(%arg0: i32, %arg1: i32) -> (i32, i32) {
    %c0_i32 = arith.constant 0 : i32
    %c0_i32_0 = arith.constant 0 : i32
    %c0_i32_1 = arith.constant 0 : i32
    return %c0_i32, %c0_i32_0 : i32, i32
  }
  func.func @transform_7(%arg0: i32, %arg1: i32) -> (i32, i32, i32) {
    %c0_i32 = arith.constant 0 : i32
    %c0_i32_0 = arith.constant 0 : i32
    return %arg0, %c0_i32, %arg1 : i32, i32, i32
  }
}

</mosaic_0001>

<bundles_post_ra>
// kernel: tpu_custom_call.1
= control target key start
LH: loop header
LB: loop body
LE: loop exit
PB: predicated region body
PF: predicated region fallthrough
CT: control target
= control target key end

     0   :  { %v542_v0 = vmov 0.0|0.0   ;;  %vm543_vm0 = vmmov 0   ;;  %v544_v4 = vmov 0.0   ;;  %v545_v7 = vmov 0   ;;  %s702_s0 = inlined_call_operand.vmem [shape: f32[2,32,16], index: 0, kind: input, shape index: {}]   ;;  %s703_s2 = inlined_call_operand.vmem [shape: f32[4,1], index: 2, kind: input, shape index: {}]   ;;  %s704_s3 = inlined_call_operand.vmem [shape: f32[4,1], index: 3, kind: input, shape index: {}]   ;;  %s705_s4 = inlined_call_operand.vmem [shape: f32[4,1], index: 4, kind: input, shape index: {}]   ;;  %s706_s1 = inlined_call_operand.vmem [shape: f32[4,32], index: 1, kind: input, shape index: {}]   ;;  %s707_s6 = inlined_call_operand.vmem [shape: f32[32,1], index: 6, kind: input, shape index: {}]   ;;  %s708_s5 = inlined_call_operand.vmem [shape: f32[32,4], index: 5, kind: input, shape index: {}]   ;;  %s709_s7 = inlined_call_operand.vmem [shape: f32[2,32,16], index: 7, kind: output, shape index: {}]  }
   0x1   :  { %516 = vmatprep.subr.bf16.mxu0 %v542_v0  ;;  %v38_v1 = vld [vmem:[%s702_s0] sm:$0xff]  ;;  %v39_v2 = vld [vmem:[%s702_s0 + $0x8] sm:$0xff]  ;;  %v40_v3 = vld [vmem:[%s702_s0 + $0x10] sm:$0xff]  ;;  %486 = vmatprep.mubr.msk.f32.mxu0 %vm543_vm0, %v544_v4  ;;  %vm47_vm1 = vcmask 261120   ;;  %vm155_vm2 = vcmask 31744   ;;  %vm168_vm3 = vcmask 1043456  }
   0x2   :  { %v517_v5 = vpack.c.bf16 %v39_v2, %v38_v1  ;;  %v41_v6 = vld [vmem:[%s702_s0 + $0x18] sm:$0xff]  ;;  %536 = vset.pattern.permute.xlu0 %v545_v7  ;;  %v27_v8 = vld [vmem:[%s703_s2] sm:$0xf]  ;;  %537 = vset.pattern.permute.xlu1 %v545_v7  ;;  %v35_v14 = vld [vmem:[%s707_s6 + $0x8] sm:$0xff]  ;;  %vm257_vm4 = vcmask 130048  }
   0x3   :  { %44 = vperm.xlu0 %536, %v27_v8   ;;  %v520_v9 = vpack.c.bf16 %v41_v6, %v40_v3  ;;  %v28_v10 = vld [vmem:[%s704_s3] sm:$0xf]  ;;  %v36_v15 = vld [vmem:[%s707_s6 + $0x10] sm:$0xff]  ;;  %v37_v16 = vld [vmem:[%s707_s6 + $0x18] sm:$0xff] }
   0x4   :  { %518 = vmatpush3.bf16.msra.mxu0 %v517_v5  ;;  %v29_v11 = vld [vmem:[%s705_s4] sm:$0xf]  ;;  %v445_v28 = vld [vmem:[%s702_s0 + $0x28] sm:$0xff]  ;;  %v32_v32 = vld [vmem:[%s708_s5 + $0x10] sm:$0xff] }
   0x5   :  { %519 = vmatprep.subr.bf16.mxu0 %v542_v0  ;;  %130 = vperm.xlu1 %537, %v29_v11   ;;  %v34_v12 = vld [vmem:[%s707_s6] sm:$0xff]  ;;  %v31_v30 = vld [vmem:[%s708_s5 + $0x8] sm:$0xff]  ;;  %v446_v33 = vld [vmem:[%s702_s0 + $0x30] sm:$0xff] }
   0x6   :  { %v26_v13 = vld [vmem:[%s706_s1] sm:$0xf]  ;;  %v447_v34 = vld [vmem:[%s702_s0 + $0x38] sm:$0xff] }
   0x7   :  { %124 = vperm.xlu0 %536, %v28_v10   ;;  %v30_v17 = vld [vmem:[%s708_s5] sm:$0xff]  ;;  %v33_v35 = vld [vmem:[%s708_s5 + $0x18] sm:$0xff]  ;;  %v526_v36 = vpack.c.bf16 %v447_v34, %v446_v33 }
   0x8   :  { %521 = vmatpush3.bf16.msra.mxu0 %v520_v9  ;;  %491 = vmatprep.mubr.msk.f32.mxu1 %vm155_vm2, %v30_v17  ;;  %v444_v27 = vld [vmem:[%s702_s0 + $0x20] sm:$0xff] }
   0x9   :  { %137 = vperm.xlu1 %537, %v34_v12   ;;  %v523_v31 = vpack.c.bf16 %v445_v28, %v444_v27 }
   0xb   :  { %487 = vmatmul.mubr.msk.f32.vlgmr.msra.gmra.mrb[0].mxu0 %vm47_vm1, %v26_v13  ;;  %142 = vperm.xlu0 %536, %v35_v14  }
   0xc   :  { %510 = vmatprep.mubr.msk.f32.mxu0 %vm155_vm2, %v30_v17 }
   0xd   :  { %147 = vperm.xlu1 %537, %v36_v15  }
   0xf   :  { %152 = vperm.xlu0 %536, %v37_v16  }
  0x82   :  { %v45_v18 = vpop.permute.xlu0 %44 }
  0x84   :  { %v131_v25 = vpop.permute.xlu1 %130 }
  0x86   :  { %v125_v23 = vpop.permute.xlu0 %124 }
  0x88   :  { %v138_v38 = vpop.permute.xlu1 %137 }
  0x8a   :  { %v143_v37 = vpop.permute.xlu0 %142 }
  0x8c   :  { %v148_v45 = vpop.permute.xlu1 %147 }
  0x8e   :  { %v153_v43 = vpop.permute.xlu0 %152 }
  0xde   :  { %v117_v19 = vpop.f32.mrb[0].mxu0 }
  0xdf   :  { %v118_v20 = vadd.f32 %v117_v19, %v45_v18  ;;  %v488_v21 = vpop.f32.mrb[1].mxu0 }
  0xe1   :  { %538 = vtanh.f32 %v118_v20 }
  0xeb   :  { %v539_v22 = vpop.eup %538 }
  0xec   :  { %v127_v24 = vmul.f32 %v539_v22, %v125_v23 }
  0xee   :  { %v133_v26 = vsub.f32 %v127_v24, %v131_v25 }
  0xf0   :  { %v530_v29 = vround.rtne.f32 %v133_v26 }
  0xf2   :  { %489 = vmatprep.subr.msk.mxu1 %vm168_vm3, %v530_v29 }
  0xf3   :  { %490 = vmatpush3.msk.msra.mxu1 %vm168_vm3, %v530_v29 }
  0xf4   :  { %492 = vmatmul.mubr.msk.f32.vlgmr.msra.gmra.mrb[0].mxu1 %vm155_vm2, %v31_v30  ;;  %522 = vmatprep.subr.bf16.mxu1 %v542_v0 }
  0xf5   :  { %524 = vmatpush3.bf16.msra.mxu1 %v523_v31  ;;  %494 = vmatprep.mubr.msk.f32.mxu1 %vm155_vm2, %v32_v32 }
  0xf6   :  { %525 = vmatprep.subr.bf16.mxu1 %v542_v0 }
  0xf8   :  { %495 = vmatmul.mubr.msk.f32.gmra.mrb[2].mxu1 %vm155_vm2, %v33_v35 }
  0xf9   :  { %527 = vmatpush3.bf16.msra.mxu1 %v526_v36  ;;  %505 = vmatprep.mubr.msk.f32.mxu1 %vm543_vm0, %v544_v4 }
  0xfc   :  { %506 = vmatmul.mubr.msk.f32.vlgmr.msra.gmra.mrb[4].mxu1 %vm47_vm1, %v26_v13 }
  0xfd   :  { %513 = vmatprep.mubr.msk.f32.mxu1 %vm155_vm2, %v32_v32 }
 0x1c7   :  { %v493_v39 = vpop.f32.mrb[0].mxu1 }
 0x1c8   :  { %v244_v40 = vadd.f32 %v493_v39, %v143_v37  ;;  %v238_v41 = vpop.f32.mrb[1].mxu1 }
 0x1c9   :  { %v239_v42 = vadd.f32 %v238_v41, %v138_v38 }
 0x1ca   :  { %259 = vst.msk [vmem:[%s709_s7 + $0x8] sm:$0xff] %vm257_vm4, %v244_v40 }
 0x1cb   :  { %258 = vst.msk [vmem:[%s709_s7] sm:$0xff] %vm257_vm4, %v239_v42  ;;  %v496_v44 = vpop.f32.mrb[2].mxu1 }
 0x1cc   :  { %v254_v46 = vadd.f32 %v496_v44, %v153_v43  ;;  %v248_v47 = vpop.f32.mrb[3].mxu1 }
 0x1cd   :  { %v249_v48 = vadd.f32 %v248_v47, %v148_v45 }
 0x1ce   :  { %261 = vst.msk [vmem:[%s709_s7 + $0x18] sm:$0xff] %vm257_vm4, %v254_v46 }
 0x1cf   :  { %260 = vst.msk [vmem:[%s709_s7 + $0x10] sm:$0xff] %vm257_vm4, %v249_v48  ;;  %v333_v49 = vpop.f32.mrb[4].mxu1 }
 0x1d0   :  { %v334_v50 = vadd.f32 %v333_v49, %v45_v18  ;;  %v507_v51 = vpop.f32.mrb[5].mxu1 }
 0x1d2   :  { %540 = vtanh.f32 %v334_v50 }
 0x1dc   :  { %v541_v52 = vpop.eup %540 }
 0x1dd   :  { %v338_v53 = vmul.f32 %v541_v52, %v125_v23 }
 0x1df   :  { %v339_v54 = vsub.f32 %v338_v53, %v131_v25 }
 0x1e1   :  { %v531_v55 = vround.rtne.f32 %v339_v54 }
 0x1e3   :  { %508 = vmatprep.subr.msk.mxu0 %vm168_vm3, %v531_v55  ;;  %528 = vmatprep.subr.msk.mxu1 %vm168_vm3, %v531_v55 }
 0x1e4   :  { %509 = vmatpush3.msk.msra.mxu0 %vm168_vm3, %v531_v55  ;;  %529 = vmatpush3.msk.msra.mxu1 %vm168_vm3, %v531_v55 }
 0x1e5   :  { %511 = vmatmul.mubr.msk.f32.vlgmr.msra.gmra.mrb[2].mxu0 %vm155_vm2, %v31_v30  ;;  %514 = vmatmul.mubr.msk.f32.vlgmr.msra.gmra.mrb[6].mxu1 %vm155_vm2, %v33_v35 }
 0x2b8   :  { %v512_v56 = vpop.f32.mrb[2].mxu0  ;;  %v515_v57 = vpop.f32.mrb[6].mxu1 }
 0x2b9   :  { %v416_v58 = vadd.f32 %v512_v56, %v143_v37  ;;  %v426_v59 = vadd.f32 %v515_v57, %v153_v43  ;;  %v410_v60 = vpop.f32.mrb[3].mxu0  ;;  %v420_v61 = vpop.f32.mrb[7].mxu1 }
 0x2ba   :  { %v411_v62 = vadd.f32 %v410_v60, %v138_v38  ;;  %v421_v63 = vadd.f32 %v420_v61, %v148_v45 }
 0x2bb   :  { %455 = vst.msk [vmem:[%s709_s7 + $0x28] sm:$0xff] %vm257_vm4, %v416_v58  ;;  %457 = vst.msk [vmem:[%s709_s7 + $0x38] sm:$0xff] %vm257_vm4, %v426_v59 }
 0x2bc   :  { %454 = vst.msk [vmem:[%s709_s7 + $0x20] sm:$0xff] %vm257_vm4, %v411_v62  ;;  %456 = vst.msk [vmem:[%s709_s7 + $0x30] sm:$0xff] %vm257_vm4, %v421_v63 }

</bundles_post_ra>
